<compile_context>
chip_gen: v7x
topology: tpu7x:2x2x1
jax: 0.10.0
libtpu: 0.0.40
codegen_flags: <defaults>
</compile_context>

<pallas_src>
import jax
import jax.numpy as jnp
from jax.experimental import pallas as pl
from jax.experimental.pallas import tpu as pltpu


def _round_up(x, m):
    return ((x + m - 1) // m) * m


def _vector_bt_kernel(g_ref, idx_ref, o_ref):
    # g_ref:   (M_pad, M_pad) f32  — Gram matrix, full-array block, VMEM-resident.
    # idx_ref: (3, tb)        i32  — stacked [i; j; k] model indices (batch on lanes).
    # o_ref:   (1, tb)        f32  — lane-dense scores.
    g = g_ref[...]                                   # (M_pad, M_pad)
    idx = idx_ref[...]                               # (3, tb)
    m_pad = g.shape[0]
    tb = idx.shape[1]

    row_ids = jax.lax.broadcasted_iota(jnp.int32, (m_pad, tb), 0)
    idx_i = idx[0:1, :]                              # (1, tb)
    idx_j = idx[1:2, :]
    idx_k = idx[2:3, :]

    # onehot(j) - onehot(k): {+1, -1, 0} per (model, lane).
    d_oh = ((row_ids == idx_j).astype(jnp.float32)
            - (row_ids == idx_k).astype(jnp.float32))            # (M_pad, tb)

    # t[m, b] = G[m, j_b] - G[m, k_b] — one small matmul on the MXU.
    t = jnp.dot(g, d_oh, preferred_element_type=jnp.float32)     # (M_pad, tb)

    # Select row i_b and reduce over the (sublane) model axis.
    score = jnp.sum(jnp.where(row_ids == idx_i, t, 0.0),
                    axis=0, keepdims=True)                       # (1, tb)
    o_ref[...] = jax.nn.sigmoid(score)


def vector_bt_forward(u_weight, v_weight, i_idx, j_idx, k_idx, *, tb=2048):
    """Pallas implementation of VectorBT.forward via a precomputed Gram matrix."""
    num_models, _d = u_weight.shape
    B = int(i_idx.shape[0])

    # ---- Tiny Gram matrix, padded to a sublane multiple ---------------------
    m_pad = _round_up(num_models, 8)
    gram = jnp.dot(u_weight.astype(jnp.float32),
                   v_weight.astype(jnp.float32).T)               # (M, M)
    gram = jnp.pad(gram, ((0, m_pad - num_models), (0, m_pad - num_models)))

    # ---- Batch tiling: clamp to problem size, keep >= 2 steps when possible --
    b_round = _round_up(max(B, 1), 128)
    tb_eff = min(tb, b_round)
    if tb_eff >= b_round and b_round >= 256:
        # Split mid-size batches so the parallel grid axis can shard across
        # both TensorCores on v7x.
        tb_eff = _round_up(b_round // 2, 128)
    n_tiles = -(-b_round // tb_eff)
    b_pad = n_tiles * tb_eff
    pad = b_pad - B

    def _prep(idx):
        idx = idx.astype(jnp.int32).reshape(-1)
        if pad:
            # Padded lanes select model 0 for i/j/k -> score 0 -> sliced off below.
            idx = jnp.pad(idx, (0, pad))
        return idx

    idx_stacked = jnp.stack([_prep(i_idx), _prep(j_idx), _prep(k_idx)], axis=0)  # (3, b_pad)

    out = pl.pallas_call(
        _vector_bt_kernel,
        out_shape=jax.ShapeDtypeStruct((1, b_pad), jnp.float32),
        grid_spec=pltpu.PrefetchScalarGridSpec(
            num_scalar_prefetch=0,
            grid=(n_tiles,),
            in_specs=[
                pl.BlockSpec((m_pad, m_pad), lambda b: (0, 0)),   # Gram (VMEM-resident)
                pl.BlockSpec((3, tb_eff), lambda b: (0, b)),      # stacked i/j/k indices
            ],
            out_specs=pl.BlockSpec((1, tb_eff), lambda b: (0, b)),  # lane-dense scores
        ),
        compiler_params=pltpu.CompilerParams(
            dimension_semantics=("parallel",)),
    )(gram, idx_stacked)

    return out[0, :B]


def _reference(u_weight, v_weight, i_idx, j_idx, k_idx):
    # Pure-JAX reference: exactly the PyTorch forward (two sums, then subtract).
    u_i = u_weight[i_idx]
    v_j = v_weight[j_idx]
    v_k = v_weight[k_idx]
    return jax.nn.sigmoid(
        jnp.sum(u_i * v_j, axis=-1) - jnp.sum(u_i * v_k, axis=-1))


if __name__ == "__main__":
    num_models = 12
    d = 32

    key = jax.random.PRNGKey(0)
    ku, kv, ki, kj, kk = jax.random.split(key, 5)

    # Deterministic parameter init mirroring nn.init.normal_(std=0.1).
    u_weight = 0.1 * jax.random.normal(ku, (num_models, d), dtype=jnp.float32)
    v_weight = 0.1 * jax.random.normal(kv, (num_models, d), dtype=jnp.float32)

    # Small main case (single tile).
    B = 16
    i_idx = jax.random.randint(ki, (B,), 0, num_models, dtype=jnp.int32)
    j_idx = jax.random.randint(kj, (B,), 0, num_models, dtype=jnp.int32)
    k_idx = jax.random.randint(kk, (B,), 0, num_models, dtype=jnp.int32)

    out = vector_bt_forward(u_weight, v_weight, i_idx, j_idx, k_idx)
    out = jax.block_until_ready(out)
    ref = _reference(u_weight, v_weight, i_idx, j_idx, k_idx)
    assert out.shape == (B,) and out.dtype == jnp.float32
    assert jnp.allclose(out, ref, atol=1e-5, rtol=1e-5)

    # Secondary check: non-multiple-of-128 batch exercising padding + a
    # multi-step parallel grid.
    B2 = 300
    ki2, kj2, kk2 = jax.random.split(ki, 3)
    i2 = jax.random.randint(ki2, (B2,), 0, num_models, dtype=jnp.int32)
    j2 = jax.random.randint(kj2, (B2,), 0, num_models, dtype=jnp.int32)
    k2 = jax.random.randint(kk2, (B2,), 0, num_models, dtype=jnp.int32)
    out2 = jax.block_until_ready(vector_bt_forward(u_weight, v_weight, i2, j2, k2))
    ref2 = _reference(u_weight, v_weight, i2, j2, k2)
    assert out2.shape == (B2,)
    assert jnp.allclose(out2, ref2, atol=1e-5, rtol=1e-5)

    print("KERNEL_OK")
</pallas_src>

<mosaic_0001>
module attributes {stable_mosaic.version = 11 : i64} {
  func.func @_vector_bt_kernel(%arg0: i32, %arg1: memref<16x16xf32, #tpu.memory_space<vmem>>, %arg2: memref<3x128xi32, #tpu.memory_space<vmem>>, %arg3: memref<1x128xf32, #tpu.memory_space<vmem>>) attributes {dimension_semantics = [#tpu.dimension_semantics<parallel>], iteration_bounds = array<i64: 1>, scalar_prefetch = 0 : i64, scratch_operands = 0 : i64, tpu.core_type = #tpu.core_type<tc>, window_params = [{pipeline_mode = #tpu.pipeline_mode<synchronous>, transform_indices = @transform_0, window_bounds = array<i64: 16, 16>}, {transform_indices = @transform_1, window_bounds = array<i64: 3, 128>}, {transform_indices = @transform_2, window_bounds = array<i64: 1, 128>}]} {
    %c0 = arith.constant 0 : index
    %c0_0 = arith.constant 0 : index
    %0 = vector.load %arg1[%c0, %c0_0] : memref<16x16xf32, #tpu.memory_space<vmem>>, vector<16x16xf32>
    %c0_1 = arith.constant 0 : index
    %c0_2 = arith.constant 0 : index
    %1 = vector.load %arg2[%c0_1, %c0_2] : memref<3x128xi32, #tpu.memory_space<vmem>>, vector<3x128xi32>
    %2 = tpu.iota {dimensions = array<i32: 0>} : vector<16x128xi32>
    %3 = vector.extract_strided_slice %1 {offsets = [0, 0], sizes = [1, 128], strides = [1, 1]} : vector<3x128xi32> to vector<1x128xi32>
    %4 = vector.extract_strided_slice %1 {offsets = [1, 0], sizes = [1, 128], strides = [1, 1]} : vector<3x128xi32> to vector<1x128xi32>
    %5 = vector.extract_strided_slice %1 {offsets = [2, 0], sizes = [1, 128], strides = [1, 1]} : vector<3x128xi32> to vector<1x128xi32>
    %6 = vector.broadcast %4 : vector<1x128xi32> to vector<16x128xi32>
    %7 = arith.cmpi eq, %2, %6 : vector<16x128xi32>
    %8 = arith.extui %7 : vector<16x128xi1> to vector<16x128xi32>
    %9 = arith.sitofp %8 : vector<16x128xi32> to vector<16x128xf32>
    %10 = vector.broadcast %5 : vector<1x128xi32> to vector<16x128xi32>
    %11 = arith.cmpi eq, %2, %10 : vector<16x128xi32>
    %12 = arith.extui %11 : vector<16x128xi1> to vector<16x128xi32>
    %13 = arith.sitofp %12 : vector<16x128xi32> to vector<16x128xf32>
    %14 = arith.subf %9, %13 : vector<16x128xf32>
    %cst = arith.constant dense<0.000000e+00> : vector<16x128xf32>
    %15 = tpu.matmul %0, %14, %cst {dimension_numbers = #tpu.dot_dimension_numbers<[1], [0], [0], [1], [0, 0, 1, 1], [], []>} : vector<16x16xf32>, vector<16x128xf32>, vector<16x128xf32> -> vector<16x128xf32>
    %16 = vector.broadcast %3 : vector<1x128xi32> to vector<16x128xi32>
    %17 = arith.cmpi eq, %2, %16 : vector<16x128xi32>
    %cst_3 = arith.constant 0.000000e+00 : f32
    %18 = vector.broadcast %cst_3 : f32 to vector<16x128xf32>
    %19 = arith.select %17, %15, %18 : vector<16x128xi1>, vector<16x128xf32>
    %cst_4 = arith.constant dense<0.000000e+00> : vector<128xf32>
    %20 = vector.multi_reduction <add>, %19, %cst_4 [0] : vector<16x128xf32> to vector<128xf32>
    %21 = vector.shape_cast %20 : vector<128xf32> to vector<1x128xf32>
    %22 = arith.negf %21 : vector<1x128xf32>
    %23 = math.exp %22 : vector<1x128xf32>
    %cst_5 = arith.constant 1.000000e+00 : f32
    %24 = vector.broadcast %cst_5 : f32 to vector<1x128xf32>
    %25 = arith.addf %24, %23 : vector<1x128xf32>
    %26 = arith.divf %24, %25 : vector<1x128xf32>
    %c0_6 = arith.constant 0 : index
    %c0_7 = arith.constant 0 : index
    %27 = vector.load %arg3[%c0_6, %c0_7] : memref<1x128xf32, #tpu.memory_space<vmem>>, vector<1x128xf32>
    tpu.vector_store %arg3[%c0_6, %c0_7], %26 {strides = array<i32>} : memref<1x128xf32, #tpu.memory_space<vmem>>, vector<1x128xf32>,
    return
  }
  func.func @transform_0(%arg0: i32) -> (i32, i32) {
    %c0_i32 = arith.constant 0 : i32
    %c0_i32_0 = arith.constant 0 : i32
    %c0_i32_1 = arith.constant 0 : i32
    return %c0_i32, %c0_i32_0 : i32, i32
  }
  func.func @transform_1(%arg0: i32) -> (i32, i32) {
    %c0_i32 = arith.constant 0 : i32
    %c0_i32_0 = arith.constant 0 : i32
    return %c0_i32, %arg0 : i32, i32
  }
  func.func @transform_2(%arg0: i32) -> (i32, i32) {
    %c0_i32 = arith.constant 0 : i32
    %c0_i32_0 = arith.constant 0 : i32
    return %c0_i32, %arg0 : i32, i32
  }
}

</mosaic_0001>

<bundles_post_ra>
// kernel: tpu_custom_call.1
= control target key start
LH: loop header
LB: loop body
LE: loop exit
PB: predicated region body
PF: predicated region fallthrough
CT: control target
= control target key end

     0   :  { %7 = vsyncpa [#allocation3], 0  ;;  %s349_s0 = inlined_call_operand.hbm [shape: f32[16,16], index: 0, kind: input, shape index: {}]   ;;  %s350_s1 = inlined_call_operand.hbm [shape: s32[3,128], index: 1, kind: input, shape index: {}]   ;;  %s351_s2 = inlined_call_operand.hbm [shape: f32[1,128], index: 2, kind: output, shape index: {}]  }
   0x1   :  { %8 = vsyncpa [#allocation6], 0 }
   0x2   :  { %9 = vsyncpa [#allocation4], 0  ;;  %s290_s9 = smov [#allocation2]   ;;  %s218_s13 = scalar_lea.hbm %s349_s0, 256 }
   0x3   :  { %s15_s10 = sshll.u32 %s290_s9, 4  ;;  %p219_p0 = scmp.ne.s32.totalorder %s349_s0, %s218_s13  ;;  %s16_s10 = int_to_ptr.vmem [resolvable:$true] %s15_s10 }
   0x4   :  { %p222_p1 = scmp.lt.u32.totalorder %s218_s13, %s349_s0 }
   0x6   :  { %p224_p2 = pnand %p222_p1, %p219_p0 }
   0x8   :  { %227 = shalt.err (!%p224_p2)
}
   0x9   :  { %s228_s18 = scalar_lea.vmem %s16_s10, 256  ;;  %p233_p4 = scmp.lt.s32.totalorder %s16_s10, %s16_s10 }
   0xa   :  { %p229_p3 = scmp.ne.s32.totalorder %s16_s10, %s228_s18  ;;  %p234_p5 = scmp.lt.s32.totalorder %s228_s18, %s228_s18 }
   0xc   :  { %p235_p6 = por %p234_p5, %p233_p4 }
   0xe   :  { %p236_p7 = pnand %p235_p6, %p229_p3 }
  0x10   :  { %239 = shalt.err (!%p236_p7)
}
  0x11   :  { %s291_s19 = smov 128   ;;  %s292_s20 = smov 8  }
  0x12   :  { %21 = dma.hbm_to_vmem [thread:$0]  %s349_s0, 256, %s16_s10, [#allocation3], %s291_s19, %s291_s19, %s292_s20  }
  0x13   :  { %s293_s23 = smov [#allocation5]   ;;  %s240_s27 = scalar_lea.hbm %s350_s1, 64 }
  0x14   :  { %s28_s24 = sshll.u32 %s293_s23, 4  ;;  %p241_p8 = scmp.ne.s32.totalorder %s350_s1, %s240_s27  ;;  %s29_s24 = int_to_ptr.vmem [resolvable:$true] %s28_s24 }
  0x15   :  { %p244_p9 = scmp.lt.u32.totalorder %s240_s27, %s350_s1 }
  0x17   :  { %p246_p10 = pnand %p244_p9, %p241_p8 }
  0x19   :  { %249 = shalt.err (!%p246_p10)
}
  0x1a   :  { %s250_s4 = scalar_lea.vmem %s29_s24, 64  ;;  %p255_p12 = scmp.lt.s32.totalorder %s29_s24, %s29_s24 }
  0x1b   :  { %p251_p11 = scmp.ne.s32.totalorder %s29_s24, %s250_s4  ;;  %p256_p13 = scmp.lt.s32.totalorder %s250_s4, %s250_s4 }
  0x1d   :  { %p257_p0 = por %p256_p13, %p255_p12 }
  0x1f   :  { %p258_p1 = pnand %p257_p0, %p251_p11 }
  0x21   :  { %261 = shalt.err (!%p258_p1)
}
  0x22   :  { %31 = dma.hbm_to_vmem [thread:$0]  %s350_s1, 64, %s29_s24, [#allocation6]  }
  0x23   :  { %284 = dma.done.wait [#allocation3], 256  }
  0x24   :  { %285 = vsyncadd [#allocation3], 4294967040 }
  0x25   :  { %286 = dma.done.wait [#allocation6], 64  }
  0x26   :  { %287 = vsyncadd [#allocation6], 4294967232  ;;  %v41_v0 = vlaneseq  ;;  %vm66_vm0 = vcmask 130048   ;;  %v40_v5 = vld [vmem:[#allocation5] sm:$0x7]  ;;  %v38_v6 = vld [vmem:[#allocation2] sm:$0xff] }
  0x27   :  { %201 = vmatprep.mubr.msk.f32.mxu0 %vm66_vm0, %v38_v6  ;;  %v294_v9 = vmov 0.0   ;;  %v39_v17 = vld [vmem:[#allocation2 + $0x8] sm:$0xff]  ;;  %s295_s1 = smov [#allocation7]  }
  0x28   :  { %v42_v1 = vshrl.u32 %v41_v0, 7  ;;  %s176_s6 = sshll.u32 %s295_s1, 4  ;;  %s177_s6 = int_to_ptr.vmem [resolvable:$true] %s176_s6 }
  0x29   :  { %s262_s7 = scalar_lea.vmem %s177_s6, 16  ;;  %s266_s8 = scalar_lea.vmem %s177_s6, 32 }
  0x2a   :  { %v46_v2 = vsub.s32 1, %v42_v1  ;;  %v56_v3 = vsub.s32 2, %v42_v1  ;;  %v43_v4 = vadd.s32 8, %v42_v1  ;;  %v150_v18 = vsub.s32 0, %v42_v1  ;;  %p263_p2 = scmp.ne.s32.totalorder %s177_s6, %s262_s7  ;;  %p267_p3 = scmp.lt.s32.totalorder %s177_s6, %s177_s6 }
  0x2b   :  { %p268_p4 = scmp.lt.s32.totalorder %s266_s8, %s262_s7 }
  0x2c   :  { %v47_v7 = vrot.slane %v40_v5, %v46_v2  ;;  %v57_v8 = vrot.slane %v40_v5, %v56_v3  ;;  %v151_v19 = vrot.slane %v40_v5, %v150_v18 }
  0x2d   :  { %p269_p5 = por %p268_p4, %p267_p3 }
  0x2e   :  { %vm48_vm1 = vcmp.eq.s32.totalorder %v42_v1, %v47_v7  ;;  %vm49_vm2 = vcmp.eq.s32.totalorder %v43_v4, %v47_v7  ;;  %vm58_vm3 = vcmp.eq.s32.totalorder %v42_v1, %v57_v8  ;;  %vm59_vm4 = vcmp.eq.s32.totalorder %v43_v4, %v57_v8 }
  0x2f   :  { %v186_v10 = vsel %vm48_vm1, 1.0, %v294_v9  ;;  %v187_v11 = vsel %vm49_vm2, 1.0, %v294_v9  ;;  %v188_v12 = vsel %vm58_vm3, 1.0, %v294_v9  ;;  %v189_v13 = vsel %vm59_vm4, 1.0, %v294_v9  ;;  %p270_p6 = pnand %p269_p5, %p263_p2 }
  0x30   :  { %v64_v14 = vsub.f32 %v186_v10, %v188_v12  ;;  %v65_v15 = vsub.f32 %v187_v11, %v189_v13  ;;  %vm153_vm5 = vcmp.eq.s32.totalorder %v43_v4, %v151_v19  ;;  %vm152_vm6 = vcmp.eq.s32.totalorder %v42_v1, %v151_v19 }
  0x32   :  { %v204_v16 = vpack.c.bf16 %v65_v15, %v64_v14 }
  0x34   :  { %205 = vmatprep.subr.bf16.mxu0 %v204_v16 }
  0x35   :  { %207 = vmatpush3.bf16.msra.mxu0 %v204_v16 }
  0x38   :  { %202 = vmatmul.mubr.msk.f32.vlgmr.msra.gmra.mrb[0].mxu0 %vm66_vm0, %v39_v17 }
 0x10b   :  { %v203_v20 = vpop.f32.mrb[0].mxu0 }
 0x10c   :  { %v155_v21 = vsel %vm153_vm5, %v203_v20, 0.0  ;;  %v139_v22 = vpop.f32.mrb[1].mxu0 }
 0x10d   :  { %v154_v23 = vsel %vm152_vm6, %v139_v22, 0.0 }
 0x10e   :  { %v156_v24 = vadd.f32 %v155_v21, %v154_v23 }
 0x110   :  { %v157_v25 = vrot.slane %v156_v24, 4 }
 0x112   :  { %v158_v26 = vadd.f32 %v157_v25, %v156_v24 }
 0x114   :  { %v159_v27 = vrot.slane %v158_v26, 2 }
 0x116   :  { %v160_v28 = vadd.f32 %v159_v27, %v158_v26 }
 0x118   :  { %v161_v29 = vrot.slane %v160_v28, 1 }
 0x11a   :  { %v162_v30 = vadd.f32 %v161_v29, %v160_v28 }
 0x11c   :  { %v192_v31 = vmul.f32 -1.442695, %v162_v30 }
 0x11e   :  { %214 = vpow2.f32 %v192_v31 }
 0x128   :  { %v215_v32 = vpop.eup %214 }
 0x129   :  { %v166_v33 = vadd.f32 1.0, %v215_v32 }
 0x12b   :  { %216 = vrcp.f32 %v166_v33 }
 0x135   :  { %v217_v34 = vpop.eup %216 }
 0x136   :  { %169 = vst [vmem:[#allocation7] sm:$0x1] %v217_v34 }
 0x137   :  { %273 = shalt.err (!%p270_p6)
}
 0x138   :  { %s274_s11 = scalar_lea.hbm %s351_s2, 16 }
 0x139   :  { %p275_p7 = scmp.ne.s32.totalorder %s351_s2, %s274_s11  ;;  %p278_p8 = scmp.lt.u32.totalorder %s274_s11, %s351_s2 }
 0x13b   :  { %p280_p9 = pnand %p278_p8, %p275_p7 }
 0x13d   :  { %283 = shalt.err (!%p280_p9)
}
 0x13e   :  { %179 = dma.vmem_to_hbm [thread:$0]  %s177_s6, 16, %s351_s2, [#allocation4]  }
 0x13f   :  { %288 = dma.done.wait [#allocation4], 16  }
 0x140   :  { %289 = vsyncadd [#allocation4], 4294967280 }
 0x141   :  { %183 = vsyncpa [#allocation3], 1 }
 0x142   :  { %184 = vsyncpa [#allocation6], 1 }
 0x143   :  { %185 = vsyncpa [#allocation4], 1 }

</bundles_post_ra>
